<compile_context>
chip_gen: v7x
topology: tpu7x:2x2x1
jax: 0.10.0
libtpu: 0.0.40
codegen_flags: <defaults>
</compile_context>

<pallas_src>
import functools

import jax
import jax.numpy as jnp
from jax.experimental import pallas as pl
from jax.experimental.pallas import tpu as pltpu


def _rmsnorm_kernel(x_ref, g_ref, o_ref, *, scale, eps):
    # x_ref / o_ref: (NB, C, T_HW)   g_ref: (1, C, 1)
    x = x_ref[...]
    # Fold sqrt(C) into the tiny (1, C, 1) gain once per block so the
    # elementwise tail is only two full-size multiplies (x * inv * gs).
    gs = g_ref[...] * scale
    sumsq = jnp.sum(x * x, axis=1, keepdims=True)             # (NB, 1, T_HW)
    # rsqrt(max(sumsq, eps^2)) == 1 / max(||x||_2, eps) exactly (sqrt is
    # monotone), so this matches F.normalize's clamp.  rsqrt runs on the EUP
    # and only on the reduced (NB, 1, T_HW) row.
    inv = jax.lax.rsqrt(jnp.maximum(sumsq, eps * eps))
    o_ref[...] = x * inv * gs


def _largest_divisor_leq(n, k):
    k = max(1, min(n, k))
    for d in range(k, 0, -1):
        if n % d == 0:
            return d
    return 1


def _round_up(x, m):
    return (x + m - 1) // m * m


def rms_norm(x_nchw, g, *, eps=1e-12, block_bytes_target=2 * 1024 * 1024):
    """x_nchw: (N, C, H, W) float32, g: (1, C, 1, 1) float32."""
    N, C, H, W = x_nchw.shape
    HW = H * W
    scale = float(C) ** 0.5
    itemsize = jnp.dtype(x_nchw.dtype).itemsize
    c_pad = _round_up(C, 8)          # f32 sublane tile is 8

    # When C is small, batch several samples per grid step to amortize the
    # fixed ~0.35us per-step overhead (the channel reduction stays per-sample
    # along axis=1, so this does not change semantics).
    nb = _largest_divisor_leq(N, max(1, 8 // max(C, 1))) if C < 8 else 1

    # Lane tile: multiple of 128, sized so one *sublane-padded* block is
    # ~block_bytes_target.  True VMEM footprint is ~4x this (x and out each
    # double-buffered), so the 2 MiB default => ~8 MiB, safe on all gens.
    lanes_budget = max(
        128, (block_bytes_target // (itemsize * c_pad * nb)) // 128 * 128
    )
    t_hw = min(lanes_budget, _round_up(HW, 128))

    x = x_nchw.reshape(N, C, HW)                 # no pad, no post-slice
    g_k = g.reshape(1, C, 1).astype(x.dtype)

    batch_steps = N // nb
    spatial_steps = pl.cdiv(HW, t_hw)

    # Put the longer parallel axis first so v7x's two TensorCores both get
    # work even when one of the axes has a single step.
    if batch_steps >= spatial_steps:
        grid = (batch_steps, spatial_steps)
        x_map = lambda n, s: (n, 0, s)
    else:
        grid = (spatial_steps, batch_steps)
        x_map = lambda s, n: (n, 0, s)
    g_map = lambda *_: (0, 0, 0)                 # gain stays resident

    kernel = functools.partial(_rmsnorm_kernel, scale=scale, eps=eps)

    # Double-buffered footprint (x + out) plus the tiny resident gain.
    block_bytes = itemsize * c_pad * nb * t_hw
    vmem_needed = 4 * block_bytes + 2 * itemsize * c_pad * 128
    compiler_kwargs = dict(dimension_semantics=("parallel", "parallel"))
    if vmem_needed > 14 * 1024 * 1024:
        # Only needed when block_bytes_target is raised past the default.
        compiler_kwargs["vmem_limit_bytes"] = min(
            vmem_needed + (4 << 20), 30 << 20
        )

    cost = pl.CostEstimate(
        flops=5 * N * C * HW,
        transcendentals=N * HW,
        bytes_accessed=2 * itemsize * N * C * HW + itemsize * C,
    )

    out = pl.pallas_call(
        kernel,
        out_shape=jax.ShapeDtypeStruct((N, C, HW), x.dtype),
        grid_spec=pltpu.PrefetchScalarGridSpec(
            num_scalar_prefetch=0,
            grid=grid,
            in_specs=[
                pl.BlockSpec((nb, C, t_hw), x_map),
                pl.BlockSpec((1, C, 1), g_map),
            ],
            out_specs=pl.BlockSpec((nb, C, t_hw), x_map),
        ),
        compiler_params=pltpu.CompilerParams(**compiler_kwargs),
        cost_estimate=cost,
    )(x, g_k)

    return out.reshape(N, C, H, W)


if __name__ == "__main__":
    key = jax.random.PRNGKey(0)
    N, C, H, W = 2, 4, 16, 16

    x = jax.random.normal(key, (N, C, H, W), dtype=jnp.float32)
    # nn.Parameter(torch.ones(1, dim, 1, 1)) -> deterministic ones.
    g = jnp.ones((1, C, 1, 1), dtype=jnp.float32)

    out = jax.block_until_ready(rms_norm(x, g))

    # Pure-JAX reference for sanity.
    sumsq = jnp.sum(x * x, axis=1, keepdims=True)
    ref = x / jnp.maximum(jnp.sqrt(sumsq), 1e-12) * g * (C ** 0.5)
    assert out.shape == (N, C, H, W)
    assert jnp.allclose(out, ref, atol=1e-5, rtol=1e-5)

    print("KERNEL_OK")
</pallas_src>

<mosaic_0001>
module attributes {stable_mosaic.version = 11 : i64} {
  func.func @_rmsnorm_kernel(%arg0: i32, %arg1: i32, %arg2: memref<2x4x256xf32, #tpu.memory_space<vmem>>, %arg3: memref<1x4x1xf32, #tpu.memory_space<vmem>>, %arg4: memref<2x4x256xf32, #tpu.memory_space<vmem>>) attributes {dimension_semantics = [#tpu.dimension_semantics<parallel>, #tpu.dimension_semantics<parallel>], iteration_bounds = array<i64: 1, 1>, scalar_prefetch = 0 : i64, scratch_operands = 0 : i64, tpu.core_type = #tpu.core_type<tc>, window_params = [{transform_indices = @transform_0, window_bounds = array<i64: 2, 4, 256>}, {pipeline_mode = #tpu.pipeline_mode<synchronous>, transform_indices = @transform_1, window_bounds = array<i64: 1, 4, 1>}, {transform_indices = @transform_2, window_bounds = array<i64: 2, 4, 256>}]} {
    %c0 = arith.constant 0 : index
    %c0_0 = arith.constant 0 : index
    %c0_1 = arith.constant 0 : index
    %0 = vector.load %arg2[%c0, %c0_0, %c0_1] : memref<2x4x256xf32, #tpu.memory_space<vmem>>, vector<2x4x256xf32>
    %c0_2 = arith.constant 0 : index
    %c0_3 = arith.constant 0 : index
    %c0_4 = arith.constant 0 : index
    %1 = vector.load %arg3[%c0_2, %c0_3, %c0_4] : memref<1x4x1xf32, #tpu.memory_space<vmem>>, vector<1x4x1xf32>
    %cst = arith.constant 2.000000e+00 : f32
    %2 = vector.broadcast %cst : f32 to vector<1x4x1xf32>
    %3 = arith.mulf %1, %2 : vector<1x4x1xf32>
    %4 = arith.mulf %0, %0 : vector<2x4x256xf32>
    %cst_5 = arith.constant dense<0.000000e+00> : vector<2x256xf32>
    %5 = vector.multi_reduction <add>, %4, %cst_5 [1] : vector<2x4x256xf32> to vector<2x256xf32>
    %6 = vector.shape_cast %5 : vector<2x256xf32> to vector<2x1x256xf32>
    %cst_6 = arith.constant 1.000000e-24 : f32
    %7 = vector.broadcast %cst_6 : f32 to vector<2x1x256xf32>
    %8 = arith.maximumf %6, %7 : vector<2x1x256xf32>
    %9 = math.rsqrt %8 : vector<2x1x256xf32>
    %10 = vector.broadcast %9 : vector<2x1x256xf32> to vector<2x4x256xf32>
    %11 = arith.mulf %0, %10 : vector<2x4x256xf32>
    %12 = vector.broadcast %3 : vector<1x4x1xf32> to vector<2x4x256xf32>
    %13 = arith.mulf %11, %12 : vector<2x4x256xf32>
    %c0_7 = arith.constant 0 : index
    %c0_8 = arith.constant 0 : index
    %c0_9 = arith.constant 0 : index
    %14 = vector.load %arg4[%c0_7, %c0_8, %c0_9] : memref<2x4x256xf32, #tpu.memory_space<vmem>>, vector<2x4x256xf32>
    tpu.vector_store %arg4[%c0_7, %c0_8, %c0_9], %13 {strides = array<i32>} : memref<2x4x256xf32, #tpu.memory_space<vmem>>, vector<2x4x256xf32>,
    return
  }
  func.func @transform_0(%arg0: i32, %arg1: i32) -> (i32, i32, i32) {
    %c0_i32 = arith.constant 0 : i32
    %c0_i32_0 = arith.constant 0 : i32
    return %arg0, %c0_i32, %arg1 : i32, i32, i32
  }
  func.func @transform_1(%arg0: i32, %arg1: i32) -> (i32, i32, i32) {
    %c0_i32 = arith.constant 0 : i32
    %c0_i32_0 = arith.constant 0 : i32
    %c0_i32_1 = arith.constant 0 : i32
    %c0_i32_2 = arith.constant 0 : i32
    return %c0_i32, %c0_i32_0, %c0_i32_1 : i32, i32, i32
  }
  func.func @transform_2(%arg0: i32, %arg1: i32) -> (i32, i32, i32) {
    %c0_i32 = arith.constant 0 : i32
    %c0_i32_0 = arith.constant 0 : i32
    return %arg0, %c0_i32, %arg1 : i32, i32, i32
  }
}

</mosaic_0001>

<bundles_post_ra>
// kernel: tpu_custom_call.1
= control target key start
LH: loop header
LB: loop body
LE: loop exit
PB: predicated region body
PF: predicated region fallthrough
CT: control target
= control target key end

     0   :  { %7 = vsyncpa [#allocation3], 0  ;;  %s235_s0 = inlined_call_operand.hbm [shape: f32[2,4,256], index: 0, kind: input, shape index: {}]   ;;  %s236_s1 = inlined_call_operand.vmem [shape: f32[1,4,1], index: 1, kind: input, shape index: {}]   ;;  %s237_s2 = inlined_call_operand.hbm [shape: f32[2,4,256], index: 2, kind: output, shape index: {}]  }
   0x1   :  { %8 = vsyncpa [#allocation4], 0  ;;  %s181_s9 = smov [#allocation2]   ;;  %s133_s13 = scalar_lea.hbm %s235_s0, 256 }
   0x2   :  { %s14_s10 = sshll.u32 %s181_s9, 4  ;;  %p134_p0 = scmp.ne.s32.totalorder %s235_s0, %s133_s13  ;;  %s15_s10 = int_to_ptr.vmem [resolvable:$true] %s14_s10 }
   0x3   :  { %p137_p1 = scmp.lt.u32.totalorder %s133_s13, %s235_s0 }
   0x5   :  { %p139_p2 = pnand %p137_p1, %p134_p0 }
   0x7   :  { %142 = shalt.err (!%p139_p2)
}
   0x8   :  { %s143_s18 = scalar_lea.vmem %s15_s10, 256  ;;  %p148_p4 = scmp.lt.s32.totalorder %s15_s10, %s15_s10 }
   0x9   :  { %p144_p3 = scmp.ne.s32.totalorder %s15_s10, %s143_s18  ;;  %p149_p5 = scmp.lt.s32.totalorder %s143_s18, %s143_s18 }
   0xb   :  { %p150_p6 = por %p149_p5, %p148_p4 }
   0xd   :  { %p151_p7 = pnand %p150_p6, %p144_p3 }
   0xf   :  { %154 = shalt.err (!%p151_p7)
}
  0x10   :  { %s182_s19 = smov 128   ;;  %s183_s20 = smov 8  }
  0x11   :  { %20 = dma.hbm_to_vmem [thread:$0]  %s235_s0, 256, %s15_s10, [#allocation3], %s182_s19, %s182_s19, %s183_s20  }
  0x12   :  { %177 = dma.done.wait [#allocation3], 256  }
  0x13   :  { %178 = vsyncadd [#allocation3], 4294967040  ;;  %v184_v0 = vmov 0   ;;  %v28_v1 = vld [vmem:[%s236_s1] sm:$0xf]  ;;  %v27_v4 = vld [vmem:[#allocation2 + $0x8] sm:$0xff]  ;;  %v92_v44 = vlaneseq }
  0x14   :  { %124 = vset.pattern.permute.xlu0 %v184_v0  ;;  %v29_v2 = vmul.f32 2.0, %v28_v1  ;;  %v26_v3 = vld [vmem:[#allocation2] sm:$0xff]  ;;  %v31_v6 = vmul.f32 %v27_v4, %v27_v4  ;;  %vm38_vm0 = vcmask 1043456   ;;  %v185_v42 = vmov 839922192   ;;  %s186_s0 = smov [#allocation5]  }
  0x15   :  { %v30_v5 = vmul.f32 %v26_v3, %v26_v3  ;;  %v90_v43 = vunpack.c.l.s4 %v185_v42  ;;  %v93_v49 = vshrl.u32 %v92_v44, 7  ;;  %s106_s1 = sshll.u32 %s186_s0, 4  ;;  %s107_s1 = int_to_ptr.vmem [resolvable:$true] %s106_s1 }
  0x16   :  { %87 = vperm.xlu0 %124, %v29_v2   ;;  %v35_v8 = vcombine.high %v31_v6, %v31_v6  ;;  %v53_v10 = vsel %vm38_vm0, %v31_v6, 0.0  ;;  %s155_s25 = scalar_lea.vmem %s107_s1, 256  ;;  %p160_p9 = scmp.lt.s32.totalorder %s107_s1, %s107_s1 }
  0x17   :  { %v34_v7 = vcombine.high %v30_v5, %v30_v5  ;;  %v39_v9 = vsel %vm38_vm0, %v30_v5, 0.0  ;;  %v54_v14 = vrot.slane %v53_v10, 4  ;;  %v91_v48 = vunpack.c.0.s8 %v90_v43  ;;  %p156_p8 = scmp.ne.s32.totalorder %s107_s1, %s155_s25  ;;  %p161_p10 = scmp.lt.s32.totalorder %s155_s25, %s155_s25 }
  0x18   :  { %v40_v12 = vrot.slane %v39_v9, 4  ;;  %v60_v13 = vsel %vm38_vm0, %v35_v8, 0.0 }
  0x19   :  { %v46_v11 = vsel %vm38_vm0, %v34_v7, 0.0  ;;  %v61_v16 = vrot.slane %v60_v13, 4  ;;  %v55_v18 = vadd.f32 %v54_v14, %v53_v10  ;;  %v94_v52 = vsub.s32 %v91_v48, %v93_v49  ;;  %p162_p11 = por %p161_p10, %p160_p9 }
  0x1a   :  { %v47_v15 = vrot.slane %v46_v11, 4  ;;  %v41_v17 = vadd.f32 %v40_v12, %v39_v9 }
  0x1b   :  { %v62_v20 = vadd.f32 %v61_v16, %v60_v13  ;;  %v56_v22 = vrot.slane %v55_v18, 2  ;;  %p163_p12 = pnand %p162_p11, %p156_p8 }
  0x1c   :  { %v48_v19 = vadd.f32 %v47_v15, %v46_v11  ;;  %v42_v21 = vrot.slane %v41_v17, 2 }
  0x1d   :  { %v63_v24 = vrot.slane %v62_v20, 2  ;;  %v57_v26 = vadd.f32 %v56_v22, %v55_v18 }
  0x1e   :  { %v49_v23 = vrot.slane %v48_v19, 2  ;;  %v43_v25 = vadd.f32 %v42_v21, %v41_v17 }
  0x1f   :  { %v64_v28 = vadd.f32 %v63_v24, %v62_v20  ;;  %v58_v30 = vrot.slane %v57_v26, 1 }
  0x20   :  { %v50_v27 = vadd.f32 %v49_v23, %v48_v19  ;;  %v44_v29 = vrot.slane %v43_v25, 1 }
  0x21   :  { %v65_v32 = vrot.slane %v64_v28, 1  ;;  %v59_v34 = vadd.f32 %v58_v30, %v57_v26 }
  0x22   :  { %v51_v31 = vrot.slane %v50_v27, 1  ;;  %v45_v33 = vadd.f32 %v44_v29, %v43_v25 }
  0x23   :  { %v66_v36 = vadd.f32 %v65_v32, %v64_v28  ;;  %v69_v38 = vmax.f32 %v59_v34, 1e-24 }
  0x24   :  { %v52_v35 = vadd.f32 %v51_v31, %v50_v27  ;;  %v67_v37 = vmax.f32 %v45_v33, 1e-24 }
  0x25   :  { %v70_v40 = vmax.f32 %v66_v36, 1e-24 }
  0x26   :  { %v68_v39 = vmax.f32 %v52_v35, 1e-24  ;;  %125 = vrsqrt.f32 %v67_v37 }
  0x27   :  { %127 = vrsqrt.f32 %v69_v38 }
  0x28   :  { %129 = vrsqrt.f32 %v68_v39 }
  0x29   :  { %131 = vrsqrt.f32 %v70_v40 }
  0x30   :  { %v126_v41 = vpop.eup %125 }
  0x31   :  { %v128_v45 = vpop.eup %127 }
  0x32   :  { %v130_v46 = vpop.eup %129 }
  0x33   :  { %v132_v47 = vpop.eup %131  ;;  %v79_v50 = vcombine.low %v126_v41, %v130_v46 }
  0x34   :  { %v80_v51 = vcombine.low %v128_v45, %v132_v47 }
  0x35   :  { %v83_v53 = vmul.f32 %v79_v50, %v26_v3 }
  0x36   :  { %v84_v54 = vmul.f32 %v80_v51, %v27_v4 }
  0x95   :  { %v88_v55 = vpop.permute.xlu0 %87 }
  0x96   :  { %v95_v56 = vrot.slane %v88_v55, %v94_v52 }
  0x98   :  { %v97_v57 = vmul.f32 %v95_v56, %v83_v53  ;;  %v98_v58 = vmul.f32 %v95_v56, %v84_v54 }
  0x9a   :  { %99 = vst [vmem:[#allocation5] sm:$0xff] %v97_v57  ;;  %100 = vst [vmem:[#allocation5 + $0x8] sm:$0xff] %v98_v58 }
  0x9b   :  { %166 = shalt.err (!%p163_p12)
}
  0x9c   :  { %s167_s28 = scalar_lea.hbm %s237_s2, 256 }
  0x9d   :  { %p168_p13 = scmp.ne.s32.totalorder %s237_s2, %s167_s28  ;;  %p171_p0 = scmp.lt.u32.totalorder %s167_s28, %s237_s2 }
  0x9f   :  { %p173_p1 = pnand %p171_p0, %p168_p13 }
  0xa1   :  { %176 = shalt.err (!%p173_p1)
}
  0xa2   :  { %112 = dma.vmem_to_hbm [thread:$0]  %s107_s1, 256, %s237_s2, [#allocation4], %s182_s19, %s182_s19, %s183_s20  }
  0xa3   :  { %179 = dma.done.wait [#allocation4], 256  }
  0xa4   :  { %180 = vsyncadd [#allocation4], 4294967040 }
  0xa5   :  { %116 = vsyncpa [#allocation3], 1 }
  0xa6   :  { %117 = vsyncpa [#allocation4], 1 }

</bundles_post_ra>
